<compile_context>
chip_gen: v7x
topology: tpu7x:2x2x1
jax: 0.10.0
libtpu: 0.0.40
codegen_flags: <defaults>
</compile_context>

<pallas_src>
import functools

import jax
import jax.numpy as jnp
import numpy as np
from jax import lax
from jax.experimental import pallas as pl
from jax.experimental.pallas import tpu as pltpu


def _mha_kernel(x_ref, wq_ref, wk_ref, wv_ref, bq_ref, bk_ref, bv_ref,
                wo_ref, bo_ref, out_ref, *attn_ref, embed_dim, need_weights):
    """Single-head attention for one batch element.

    x_ref:   (L, E)  input tile for this batch element
    w?_ref:  (E, E)  pre-transposed projection weights (resident in VMEM)
    b?_ref:  (1, E)  projection biases
    out_ref: (L, E)  attention output tile
    attn_ref (optional): (L, L) softmax attention weights tile
    """
    x = x_ref[...]

    # Three small MXU matmuls (same pass count as one fused (E, 3E) matmul at
    # E <= MXU width) -- avoids non-lane-aligned slicing of a fused result.
    q = jnp.dot(x, wq_ref[...], preferred_element_type=jnp.float32) + bq_ref[...]
    k = jnp.dot(x, wk_ref[...], preferred_element_type=jnp.float32) + bk_ref[...]
    v = jnp.dot(x, wv_ref[...], preferred_element_type=jnp.float32) + bv_ref[...]

    scale = 1.0 / float(np.sqrt(embed_dim))
    # (L, L) scores: contract the embed dims directly -- no in-kernel transpose.
    s = lax.dot_general(q * scale, k,
                        dimension_numbers=(((1,), (1,)), ((), ())),
                        preferred_element_type=jnp.float32)

    # Numerically-stable softmax in f32.
    m = jnp.max(s, axis=-1, keepdims=True)
    p = jnp.exp(s - m)
    denom = jnp.sum(p, axis=-1, keepdims=True)

    if need_weights:
        # Exact reciprocal so returned weights match torch within 1e-5.
        attn = p * pl.reciprocal(denom, approx=False)
        o = jnp.dot(attn, v, preferred_element_type=jnp.float32)   # (L, E)
        attn_ref[0][...] = attn.astype(attn_ref[0].dtype)
    else:
        # Flash-style: normalize the (L, E) output once at the end; the approx
        # reciprocal lowers to the otherwise-idle EUP slot.
        o = jnp.dot(p, v, preferred_element_type=jnp.float32)      # (L, E)
        o = o * pl.reciprocal(denom, approx=True)

    # Output projection with pre-transposed weight.
    y = jnp.dot(o, wo_ref[...], preferred_element_type=jnp.float32) + bo_ref[...]
    out_ref[...] = y.astype(out_ref.dtype)


def self_attention(x_lne, in_proj_weight, in_proj_bias, out_proj_weight,
                   out_proj_bias, *, need_weights=True):
    """Forward of torch.nn.MultiheadAttention(E, heads=1) with query=key=value=x.

    x_lne: (L, N, E) seq-first (PyTorch default layout).
    Returns (attn_output (L, N, E), attn_weights (N, L, L) or None).
    """
    L, N, E = x_lne.shape

    # One-time parameter plumbing (tiny arrays, outside the kernel): split the
    # packed (3E, E) in_proj into per-Q/K/V operands, pre-transposed for x @ W^T.
    wq_t = jnp.transpose(in_proj_weight[0 * E:1 * E])    # (E, E)
    wk_t = jnp.transpose(in_proj_weight[1 * E:2 * E])    # (E, E)
    wv_t = jnp.transpose(in_proj_weight[2 * E:3 * E])    # (E, E)
    bq = in_proj_bias[0 * E:1 * E].reshape(1, E)
    bk = in_proj_bias[1 * E:2 * E].reshape(1, E)
    bv = in_proj_bias[2 * E:3 * E].reshape(1, E)
    wo_t = jnp.transpose(out_proj_weight)                # (E, E)
    bo = out_proj_bias.reshape(1, E)

    # TODO(synk): fold the seq-major (L, N, E) layout straight into the x/out
    # BlockSpecs (block (L, 1, E), index_map (0, n, 0)) to drop these two
    # wrapper transposes; kept here because a second-minor block of 1 over N
    # violates the documented (8, 128) block-shape rule.
    x_nle = jnp.transpose(x_lne, (1, 0, 2))              # (N, L, E) batch-major

    kernel = functools.partial(_mha_kernel, embed_dim=E,
                               need_weights=need_weights)

    def batch_spec(last):   # per-batch (L, last) tile, leading dim squeezed
        return pl.BlockSpec((None, L, last), lambda n: (n, 0, 0))

    def resident_spec(rows, cols):   # constant block index -> stays in VMEM
        return pl.BlockSpec((rows, cols), lambda n: (0, 0))

    in_specs = [
        batch_spec(E),                                                  # x
        resident_spec(E, E), resident_spec(E, E), resident_spec(E, E),  # wq,wk,wv
        resident_spec(1, E), resident_spec(1, E), resident_spec(1, E),  # bq,bk,bv
        resident_spec(E, E), resident_spec(1, E),                       # wo, bo
    ]

    if need_weights:
        out_shape = (jax.ShapeDtypeStruct((N, L, E), x_lne.dtype),
                     jax.ShapeDtypeStruct((N, L, L), x_lne.dtype))
        out_specs = (batch_spec(E), batch_spec(L))
    else:
        out_shape = jax.ShapeDtypeStruct((N, L, E), x_lne.dtype)
        out_specs = batch_spec(E)

    result = pl.pallas_call(
        kernel,
        grid=(N,),
        in_specs=in_specs,
        out_specs=out_specs,
        out_shape=out_shape,
        compiler_params=pltpu.CompilerParams(
            # Batch elements are independent -> shard the grid across
            # TensorCores on v7x; no-op on single-TC v5e/v6e.
            dimension_semantics=("parallel",),
            # Live f32 VMEM per step: ~4*E*E (weights) + ~6*L*E (x/q/k/v/o/out)
            # + ~2*L*L (scores/weights), double-buffered -- far under 32 MiB at
            # these shapes; set explicitly so scaling L/E fails loudly.
            vmem_limit_bytes=32 * 1024 * 1024,
        ),
    )(x_nle, wq_t, wk_t, wv_t, bq, bk, bv, wo_t, bo)

    if need_weights:
        out_nle, attn_nll = result
    else:
        out_nle, attn_nll = result, None

    return jnp.transpose(out_nle, (1, 0, 2)), attn_nll


def _reference(x_lne, w_in, b_in, w_out, b_out):
    """Plain-JAX reference matching torch.nn.MultiheadAttention(E, 1)."""
    L, N, E = x_lne.shape
    x = jnp.transpose(x_lne, (1, 0, 2)).astype(jnp.float32)       # (N, L, E)
    wq, wk, wv = w_in[:E], w_in[E:2 * E], w_in[2 * E:]
    bq, bk, bv = b_in[:E], b_in[E:2 * E], b_in[2 * E:]
    q = x @ wq.T + bq
    k = x @ wk.T + bk
    v = x @ wv.T + bv
    s = jnp.einsum("nqe,nke->nqk", q, k) / jnp.sqrt(jnp.float32(E))
    p = jax.nn.softmax(s, axis=-1)
    o = jnp.einsum("nqk,nke->nqe", p, v)
    y = o @ w_out.T + b_out
    return jnp.transpose(y, (1, 0, 2)), p


if __name__ == "__main__":
    # Small shapes: seq L=8, batch N=2, embed_dim E=32, heads=1.
    L, N, E = 8, 2, 32
    key = jax.random.PRNGKey(0)
    kx, k1, k2, k3, k4 = jax.random.split(key, 5)

    x = jax.random.normal(kx, (L, N, E), dtype=jnp.float32)

    # Deterministic parameter init (shapes match nn.MultiheadAttention(E, 1)).
    bound = 1.0 / np.sqrt(E)
    in_proj_weight = jax.random.uniform(k1, (3 * E, E), minval=-bound, maxval=bound,
                                        dtype=jnp.float32)
    in_proj_bias = jax.random.uniform(k2, (3 * E,), minval=-bound, maxval=bound,
                                      dtype=jnp.float32)
    out_proj_weight = jax.random.uniform(k3, (E, E), minval=-bound, maxval=bound,
                                         dtype=jnp.float32)
    out_proj_bias = jax.random.uniform(k4, (E,), minval=-bound, maxval=bound,
                                       dtype=jnp.float32)

    ref_out, ref_w = _reference(x, in_proj_weight, in_proj_bias,
                                out_proj_weight, out_proj_bias)

    # Default path (matches the PyTorch module: returns output + attn weights).
    out, attn_w = self_attention(x, in_proj_weight, in_proj_bias,
                                 out_proj_weight, out_proj_bias)
    out = jax.block_until_ready(out)
    attn_w = jax.block_until_ready(attn_w)
    np.testing.assert_allclose(np.asarray(out), np.asarray(ref_out),
                               atol=1e-4, rtol=1e-4)
    np.testing.assert_allclose(np.asarray(attn_w), np.asarray(ref_w),
                               atol=1e-5, rtol=1e-5)

    # Bandwidth-lean path: no attention-weights output, approx EUP reciprocal.
    out_nw, attn_nw = self_attention(x, in_proj_weight, in_proj_bias,
                                     out_proj_weight, out_proj_bias,
                                     need_weights=False)
    out_nw = jax.block_until_ready(out_nw)
    assert attn_nw is None
    np.testing.assert_allclose(np.asarray(out_nw), np.asarray(ref_out),
                               atol=1e-2, rtol=1e-2)

    print("KERNEL_OK")
</pallas_src>

<mosaic_0001>
module attributes {stable_mosaic.version = 11 : i64} {
  func.func @_mha_kernel(%arg0: i32, %arg1: memref<1x8x32xf32, #tpu.memory_space<vmem>>, %arg2: memref<32x32xf32, #tpu.memory_space<vmem>>, %arg3: memref<32x32xf32, #tpu.memory_space<vmem>>, %arg4: memref<32x32xf32, #tpu.memory_space<vmem>>, %arg5: memref<1x32xf32, #tpu.memory_space<vmem>>, %arg6: memref<1x32xf32, #tpu.memory_space<vmem>>, %arg7: memref<1x32xf32, #tpu.memory_space<vmem>>, %arg8: memref<32x32xf32, #tpu.memory_space<vmem>>, %arg9: memref<1x32xf32, #tpu.memory_space<vmem>>, %arg10: memref<1x8x32xf32, #tpu.memory_space<vmem>>, %arg11: memref<1x8x8xf32, #tpu.memory_space<vmem>>) attributes {dimension_semantics = [#tpu.dimension_semantics<parallel>], iteration_bounds = array<i64: 2>, scalar_prefetch = 0 : i64, scratch_operands = 0 : i64, tpu.core_type = #tpu.core_type<tc>, window_params = [{transform_indices = @transform_0, window_bounds = array<i64: 1, 8, 32>}, {pipeline_mode = #tpu.pipeline_mode<synchronous>, transform_indices = @transform_1, window_bounds = array<i64: 32, 32>}, {pipeline_mode = #tpu.pipeline_mode<synchronous>, transform_indices = @transform_2, window_bounds = array<i64: 32, 32>}, {pipeline_mode = #tpu.pipeline_mode<synchronous>, transform_indices = @transform_3, window_bounds = array<i64: 32, 32>}, {pipeline_mode = #tpu.pipeline_mode<synchronous>, transform_indices = @transform_4, window_bounds = array<i64: 1, 32>}, {pipeline_mode = #tpu.pipeline_mode<synchronous>, transform_indices = @transform_5, window_bounds = array<i64: 1, 32>}, {pipeline_mode = #tpu.pipeline_mode<synchronous>, transform_indices = @transform_6, window_bounds = array<i64: 1, 32>}, {pipeline_mode = #tpu.pipeline_mode<synchronous>, transform_indices = @transform_7, window_bounds = array<i64: 32, 32>}, {pipeline_mode = #tpu.pipeline_mode<synchronous>, transform_indices = @transform_8, window_bounds = array<i64: 1, 32>}, {transform_indices = @transform_9, window_bounds = array<i64: 1, 8, 32>}, {transform_indices = @transform_10, window_bounds = array<i64: 1, 8, 8>}]} {
    %c0 = arith.constant 0 : index
    %c0_0 = arith.constant 0 : index
    %c0_1 = arith.constant 0 : index
    %0 = vector.load %arg1[%c0, %c0_0, %c0_1] : memref<1x8x32xf32, #tpu.memory_space<vmem>>, vector<1x8x32xf32>
    %1 = vector.shape_cast %0 : vector<1x8x32xf32> to vector<8x32xf32>
    %c0_2 = arith.constant 0 : index
    %c0_3 = arith.constant 0 : index
    %2 = vector.load %arg2[%c0_2, %c0_3] : memref<32x32xf32, #tpu.memory_space<vmem>>, vector<32x32xf32>
    %cst = arith.constant dense<0.000000e+00> : vector<8x32xf32>
    %3 = tpu.matmul %1, %2, %cst {dimension_numbers = #tpu.dot_dimension_numbers<[1], [0], [0], [1], [0, 0, 1, 1], [], []>} : vector<8x32xf32>, vector<32x32xf32>, vector<8x32xf32> -> vector<8x32xf32>
    %c0_4 = arith.constant 0 : index
    %c0_5 = arith.constant 0 : index
    %4 = vector.load %arg5[%c0_4, %c0_5] : memref<1x32xf32, #tpu.memory_space<vmem>>, vector<1x32xf32>
    %5 = vector.broadcast %4 : vector<1x32xf32> to vector<8x32xf32>
    %6 = arith.addf %3, %5 : vector<8x32xf32>
    %c0_6 = arith.constant 0 : index
    %c0_7 = arith.constant 0 : index
    %7 = vector.load %arg3[%c0_6, %c0_7] : memref<32x32xf32, #tpu.memory_space<vmem>>, vector<32x32xf32>
    %cst_8 = arith.constant dense<0.000000e+00> : vector<8x32xf32>
    %8 = tpu.matmul %1, %7, %cst_8 {dimension_numbers = #tpu.dot_dimension_numbers<[1], [0], [0], [1], [0, 0, 1, 1], [], []>} : vector<8x32xf32>, vector<32x32xf32>, vector<8x32xf32> -> vector<8x32xf32>
    %c0_9 = arith.constant 0 : index
    %c0_10 = arith.constant 0 : index
    %9 = vector.load %arg6[%c0_9, %c0_10] : memref<1x32xf32, #tpu.memory_space<vmem>>, vector<1x32xf32>
    %10 = vector.broadcast %9 : vector<1x32xf32> to vector<8x32xf32>
    %11 = arith.addf %8, %10 : vector<8x32xf32>
    %c0_11 = arith.constant 0 : index
    %c0_12 = arith.constant 0 : index
    %12 = vector.load %arg4[%c0_11, %c0_12] : memref<32x32xf32, #tpu.memory_space<vmem>>, vector<32x32xf32>
    %cst_13 = arith.constant dense<0.000000e+00> : vector<8x32xf32>
    %13 = tpu.matmul %1, %12, %cst_13 {dimension_numbers = #tpu.dot_dimension_numbers<[1], [0], [0], [1], [0, 0, 1, 1], [], []>} : vector<8x32xf32>, vector<32x32xf32>, vector<8x32xf32> -> vector<8x32xf32>
    %c0_14 = arith.constant 0 : index
    %c0_15 = arith.constant 0 : index
    %14 = vector.load %arg7[%c0_14, %c0_15] : memref<1x32xf32, #tpu.memory_space<vmem>>, vector<1x32xf32>
    %15 = vector.broadcast %14 : vector<1x32xf32> to vector<8x32xf32>
    %16 = arith.addf %13, %15 : vector<8x32xf32>
    %cst_16 = arith.constant 0.176776692 : f32
    %17 = vector.broadcast %cst_16 : f32 to vector<8x32xf32>
    %18 = arith.mulf %6, %17 : vector<8x32xf32>
    %cst_17 = arith.constant dense<0.000000e+00> : vector<8x8xf32>
    %19 = tpu.matmul %18, %11, %cst_17 {dimension_numbers = #tpu.dot_dimension_numbers<[1], [1], [0], [0], [0, 0, 1, 0], [], []>} : vector<8x32xf32>, vector<8x32xf32>, vector<8x8xf32> -> vector<8x8xf32>
    %cst_18 = arith.constant dense<0xFF800000> : vector<8xf32>
    %20 = vector.multi_reduction <maximumf>, %19, %cst_18 [1] : vector<8x8xf32> to vector<8xf32>
    %21 = vector.shape_cast %20 : vector<8xf32> to vector<8x1xf32>
    %22 = vector.broadcast %21 : vector<8x1xf32> to vector<8x8xf32>
    %23 = arith.subf %19, %22 : vector<8x8xf32>
    %24 = math.exp %23 : vector<8x8xf32>
    %cst_19 = arith.constant dense<0.000000e+00> : vector<8xf32>
    %25 = vector.multi_reduction <add>, %24, %cst_19 [1] : vector<8x8xf32> to vector<8xf32>
    %26 = vector.shape_cast %25 : vector<8xf32> to vector<8x1xf32>
    %27 = tpu.reciprocal %26 : vector<8x1xf32> -> vector<8x1xf32>
    %28 = vector.broadcast %27 : vector<8x1xf32> to vector<8x8xf32>
    %29 = arith.mulf %24, %28 : vector<8x8xf32>
    %cst_20 = arith.constant dense<0.000000e+00> : vector<8x32xf32>
    %30 = tpu.matmul %29, %16, %cst_20 {dimension_numbers = #tpu.dot_dimension_numbers<[1], [0], [0], [1], [0, 0, 1, 1], [], []>} : vector<8x8xf32>, vector<8x32xf32>, vector<8x32xf32> -> vector<8x32xf32>
    %c0_21 = arith.constant 0 : index
    %c0_22 = arith.constant 0 : index
    %c0_23 = arith.constant 0 : index
    %31 = vector.load %arg11[%c0_21, %c0_22, %c0_23] : memref<1x8x8xf32, #tpu.memory_space<vmem>>, vector<1x8x8xf32>
    %32 = vector.shape_cast %31 : vector<1x8x8xf32> to vector<8x8xf32>
    %33 = vector.shape_cast %29 : vector<8x8xf32> to vector<1x8x8xf32>
    tpu.vector_store %arg11[%c0_21, %c0_22, %c0_23], %33 {strides = array<i32>} : memref<1x8x8xf32, #tpu.memory_space<vmem>>, vector<1x8x8xf32>,
    %c0_24 = arith.constant 0 : index
    %c0_25 = arith.constant 0 : index
    %34 = vector.load %arg8[%c0_24, %c0_25] : memref<32x32xf32, #tpu.memory_space<vmem>>, vector<32x32xf32>
    %cst_26 = arith.constant dense<0.000000e+00> : vector<8x32xf32>
    %35 = tpu.matmul %30, %34, %cst_26 {dimension_numbers = #tpu.dot_dimension_numbers<[1], [0], [0], [1], [0, 0, 1, 1], [], []>} : vector<8x32xf32>, vector<32x32xf32>, vector<8x32xf32> -> vector<8x32xf32>
    %c0_27 = arith.constant 0 : index
    %c0_28 = arith.constant 0 : index
    %36 = vector.load %arg9[%c0_27, %c0_28] : memref<1x32xf32, #tpu.memory_space<vmem>>, vector<1x32xf32>
    %37 = vector.broadcast %36 : vector<1x32xf32> to vector<8x32xf32>
    %38 = arith.addf %35, %37 : vector<8x32xf32>
    %c0_29 = arith.constant 0 : index
    %c0_30 = arith.constant 0 : index
    %c0_31 = arith.constant 0 : index
    %39 = vector.load %arg10[%c0_29, %c0_30, %c0_31] : memref<1x8x32xf32, #tpu.memory_space<vmem>>, vector<1x8x32xf32>
    %40 = vector.shape_cast %39 : vector<1x8x32xf32> to vector<8x32xf32>
    %41 = vector.shape_cast %38 : vector<8x32xf32> to vector<1x8x32xf32>
    tpu.vector_store %arg10[%c0_29, %c0_30, %c0_31], %41 {strides = array<i32>} : memref<1x8x32xf32, #tpu.memory_space<vmem>>, vector<1x8x32xf32>,
    return
  }
  func.func @transform_0(%arg0: i32) -> (i32, i32, i32) {
    %c0_i32 = arith.constant 0 : i32
    %c0_i32_0 = arith.constant 0 : i32
    %c0_i32_1 = arith.constant 0 : i32
    return %arg0, %c0_i32, %c0_i32_0 : i32, i32, i32
  }
  func.func @transform_1(%arg0: i32) -> (i32, i32) {
    %c0_i32 = arith.constant 0 : i32
    %c0_i32_0 = arith.constant 0 : i32
    %c0_i32_1 = arith.constant 0 : i32
    return %c0_i32, %c0_i32_0 : i32, i32
  }
  func.func @transform_2(%arg0: i32) -> (i32, i32) {
    %c0_i32 = arith.constant 0 : i32
    %c0_i32_0 = arith.constant 0 : i32
    %c0_i32_1 = arith.constant 0 : i32
    return %c0_i32, %c0_i32_0 : i32, i32
  }
  func.func @transform_3(%arg0: i32) -> (i32, i32) {
    %c0_i32 = arith.constant 0 : i32
    %c0_i32_0 = arith.constant 0 : i32
    %c0_i32_1 = arith.constant 0 : i32
    return %c0_i32, %c0_i32_0 : i32, i32
  }
  func.func @transform_4(%arg0: i32) -> (i32, i32) {
    %c0_i32 = arith.constant 0 : i32
    %c0_i32_0 = arith.constant 0 : i32
    %c0_i32_1 = arith.constant 0 : i32
    return %c0_i32, %c0_i32_0 : i32, i32
  }
  func.func @transform_5(%arg0: i32) -> (i32, i32) {
    %c0_i32 = arith.constant 0 : i32
    %c0_i32_0 = arith.constant 0 : i32
    %c0_i32_1 = arith.constant 0 : i32
    return %c0_i32, %c0_i32_0 : i32, i32
  }
  func.func @transform_6(%arg0: i32) -> (i32, i32) {
    %c0_i32 = arith.constant 0 : i32
    %c0_i32_0 = arith.constant 0 : i32
    %c0_i32_1 = arith.constant 0 : i32
    return %c0_i32, %c0_i32_0 : i32, i32
  }
  func.func @transform_7(%arg0: i32) -> (i32, i32) {
    %c0_i32 = arith.constant 0 : i32
    %c0_i32_0 = arith.constant 0 : i32
    %c0_i32_1 = arith.constant 0 : i32
    return %c0_i32, %c0_i32_0 : i32, i32
  }
  func.func @transform_8(%arg0: i32) -> (i32, i32) {
    %c0_i32 = arith.constant 0 : i32
    %c0_i32_0 = arith.constant 0 : i32
    %c0_i32_1 = arith.constant 0 : i32
    return %c0_i32, %c0_i32_0 : i32, i32
  }
  func.func @transform_9(%arg0: i32) -> (i32, i32, i32) {
    %c0_i32 = arith.constant 0 : i32
    %c0_i32_0 = arith.constant 0 : i32
    %c0_i32_1 = arith.constant 0 : i32
    return %arg0, %c0_i32, %c0_i32_0 : i32, i32, i32
  }
  func.func @transform_10(%arg0: i32) -> (i32, i32, i32) {
    %c0_i32 = arith.constant 0 : i32
    %c0_i32_0 = arith.constant 0 : i32
    %c0_i32_1 = arith.constant 0 : i32
    return %arg0, %c0_i32, %c0_i32_0 : i32, i32, i32
  }
}

</mosaic_0001>

<bundles_post_ra>
// kernel: tpu_custom_call.1
= control target key start
LH: loop header
LB: loop body
LE: loop exit
PB: predicated region body
PF: predicated region fallthrough
CT: control target
= control target key end

     0   :  { %s2029_s0 = inlined_call_operand.hbm [shape: f32[2,8,32], index: 0, kind: input, shape index: {}]   ;;  %s2030_s1 = inlined_call_operand.hbm [shape: f32[32,32], index: 1, kind: input, shape index: {}]   ;;  %s2031_s2 = inlined_call_operand.hbm [shape: f32[32,32], index: 2, kind: input, shape index: {}]   ;;  %s2032_s3 = inlined_call_operand.hbm [shape: f32[32,32], index: 3, kind: input, shape index: {}]   ;;  %s2033_s4 = inlined_call_operand.vmem [shape: f32[1,32], index: 4, kind: input, shape index: {}]   ;;  %s2034_s5 = inlined_call_operand.vmem [shape: f32[1,32], index: 5, kind: input, shape index: {}]   ;;  %s2035_s6 = inlined_call_operand.vmem [shape: f32[1,32], index: 6, kind: input, shape index: {}]   ;;  %s2036_s7 = inlined_call_operand.hbm [shape: f32[32,32], index: 7, kind: input, shape index: {}]   ;;  %s2037_s8 = inlined_call_operand.vmem [shape: f32[1,32], index: 8, kind: input, shape index: {}]   ;;  %s2038_s9 = inlined_call_operand.hbm [shape: f32[2,8,32], index: 9, kind: output, shape index: {0}]   ;;  %s2039_s10 = inlined_call_operand.hbm [shape: f32[2,8,8], index: 10, kind: output, shape index: {1}]  }
   0x1   :  { %2044 = sst [smem:[#allocation19_spill]] %s2029_s0 }
   0x2   :  { %2045 = sst [smem:[#allocation20_spill]] %s2030_s1 }
   0x3   :  { %2046 = sst [smem:[#allocation21_spill]] %s2037_s8 }
   0x4   :  { %2047 = sst [smem:[#allocation22_spill]] %s2038_s9 }
   0x5   :  { %16 = vsyncpa [#allocation3], 0 }
   0x6   :  { %18 = vsyncpa [#allocation3 + $0x1], 0 }
   0x7   :  { %19 = vsyncpa [#allocation6], 0 }
   0x8   :  { %20 = vsyncpa [#allocation9], 0 }
   0x9   :  { %21 = vsyncpa [#allocation4], 0 }
   0xa   :  { %23 = vsyncpa [#allocation4 + $0x1], 0 }
   0xb   :  { %24 = vsyncpa [#allocation13], 0 }
   0xc   :  { %26 = vsyncpa [#allocation13 + $0x1], 0  ;;  %s1666_s13 = smov 0   ;;  %s1668_s14 = smov 0  }
   0xd   :  { %s1670_s15 = smov 0   ;;  %s1672_s16 = smov 0  }
   0xe LB: > { %s1599_s17 = smov [#allocation5]   ;;  %s1687_s19 = sadd.s32 4294967295, %s1597_s16   ;;  %s1597_s16 = sphi %s1672_s16, %s2072_s16   ;;  %s1593_s15 = sphi %s1670_s15, %s2071_s15   ;;  %s1589_s14 = sphi %s1668_s14, %s2070_s14   ;;  %s1585_s13 = sphi %s1666_s13, %s2069_s13  }
   0xf   : > { %s295_s18 = sshll.u32 %s1599_s17, 4  ;;  %p1113_p0 = scmp.ge.s32.totalorder %s1597_s16, 1  ;;  %s1692_s18 = int_to_ptr.vmem [resolvable:$true] %s295_s18 }
  0x10   : > { %p2041_p1 = scmp.eq.s32.totalorder %s1687_s19, 0  ;;  %p283_p2 = scmp.lt.s32.totalorder %s1597_s16, 3 }
  0x11   : > { %s1600_s21 = smov [#allocation8]   ;;  %s1601_s24 = smov [#allocation7]  }
  0x12   : > { %p1694_p3 = pnand %p1113_p0, %p283_p2  ;;  %s321_s22 = sshll.u32 %s1600_s21, 4  ;;  %s1707_s22 = int_to_ptr.vmem [resolvable:$true] %s321_s22 }
  0x13   : > { %s308_s25 = sshll.u32 %s1601_s24, 4  ;;  %s2050_s1 = sld [smem:[#allocation20_spill]]  ;;  %s1709_s25 = int_to_ptr.vmem [resolvable:$true] %s308_s25 }
  0x14   : > { %s2048_s20 = scalar_select %p1694_p3, 1, 0 }
  0x15   : > { %p1270_p5 = pneg %p1694_p3 }
  0x17   : > { %p1703_p6 = pnand %p1270_p5, %p2041_p1 }
  0x19   : > { %s1349_s28 = scalar_lea.hbm %s2050_s1, 512  ;;  %p1719_p8 = pneg %p1703_p6 }
  0x1a   : > { %p1350_p7 = scmp.ne.s32.totalorder %s2050_s1, %s1349_s28  ;;  %p1356_p11 = scmp.lt.u32.totalorder %s1349_s28, %s2050_s1 }
  0x1c   : > { %p1352_p9 = pnand %p1719_p8, %p1350_p7 }
  0x1e   : > { %p1353_p10 = pneg %p1352_p9 }
  0x20   : > { %p1358_p12 = pnand %p1356_p11, %p1353_p10 }
  0x22   : > { %1361 = shalt.err (!%p1358_p12)
}
  0x23   : > { %s1362_s21 = scalar_lea.vmem %s1692_s18, 512  ;;  %p1370_p5 = scmp.lt.s32.totalorder %s1692_s18, %s1692_s18 }
  0x24   : > { %p1363_p13 = scmp.ne.s32.totalorder %s1692_s18, %s1362_s21  ;;  %p1371_p4 = scmp.lt.s32.totalorder %s1362_s21, %s1362_s21 }
  0x26   : > { %p1365_p0 = pnand %p1363_p13, %p1719_p8  ;;  %p1372_p7 = por %p1371_p4, %p1370_p5 }
  0x28   : > { %p1366_p2 = pneg %p1365_p0 }
  0x2a   : > { %p1373_p9 = pnand %p1372_p7, %p1366_p2 }
  0x2c   : > { %1376 = shalt.err (!%p1373_p9)
}
  0x2d   : > { %s1602_s24 = smov 128   ;;  %s1603_s26 = smov 8  }
  0x2e   : > { %1273 = dma.hbm_to_vmem [thread:$0]  (!%p1703_p6), %s2050_s1, 512, %s1692_s18, [#allocation6], %s1602_s24, %s1602_s24, %s1603_s26  }
  0x2f   : > { %s1377_s12 = scalar_lea.hbm %s2032_s3, 512 }
  0x30   : > { %p1378_p4 = scmp.ne.s32.totalorder %s2032_s3, %s1377_s12  ;;  %p1384_p12 = scmp.lt.u32.totalorder %s1377_s12, %s2032_s3 }
  0x32   : > { %p1380_p10 = pnand %p1378_p4, %p1719_p8 }
  0x34   : > { %p1381_p11 = pneg %p1380_p10 }
  0x36   : > { %p1386_p13 = pnand %p1384_p12, %p1381_p11 }
  0x38   : > { %1389 = shalt.err (!%p1386_p13)
}
  0x39   : > { %s1390_s18 = scalar_lea.vmem %s1707_s22, 512  ;;  %p1398_p7 = scmp.lt.s32.totalorder %s1707_s22, %s1707_s22 }
  0x3a   : > { %p1391_p0 = scmp.ne.s32.totalorder %s1707_s22, %s1390_s18  ;;  %p1399_p9 = scmp.lt.s32.totalorder %s1390_s18, %s1390_s18 }
  0x3c   : > { %p1393_p2 = pnand %p1391_p0, %p1719_p8  ;;  %p1400_p4 = por %p1399_p9, %p1398_p7 }
  0x3e   : > { %p1394_p5 = pneg %p1393_p2 }
  0x40   : > { %p1401_p10 = pnand %p1400_p4, %p1394_p5 }
  0x42   : > { %1404 = shalt.err (!%p1401_p10)
}
  0x43   : > { %1279 = dma.hbm_to_vmem [thread:$0]  (!%p1703_p6), %s2032_s3, 512, %s1707_s22, [#allocation9], %s1602_s24, %s1602_s24, %s1603_s26  }
  0x44   : > { %s1405_s29 = scalar_lea.hbm %s2031_s2, 512 }
  0x45   : > { %p1406_p11 = scmp.ne.s32.totalorder %s2031_s2, %s1405_s29  ;;  %p1412_p0 = scmp.lt.u32.totalorder %s1405_s29, %s2031_s2 }
  0x47   : > { %p1408_p12 = pnand %p1406_p11, %p1719_p8 }
  0x49   : > { %p1409_p13 = pneg %p1408_p12 }
  0x4b   : > { %p1414_p2 = pnand %p1412_p0, %p1409_p13 }
  0x4d   : > { %1417 = shalt.err (!%p1414_p2)
}
  0x4e   : > { %s1418_s22 = scalar_lea.vmem %s1709_s25, 512  ;;  %p1426_p4 = scmp.lt.s32.totalorder %s1709_s25, %s1709_s25 }
  0x4f   : > { %p1419_p5 = scmp.ne.s32.totalorder %s1709_s25, %s1418_s22  ;;  %p1427_p10 = scmp.lt.s32.totalorder %s1418_s22, %s1418_s22 }
  0x51   : > { %p1421_p7 = pnand %p1419_p5, %p1719_p8  ;;  %p1428_p11 = por %p1427_p10, %p1426_p4 }
  0x53   : > { %p1422_p9 = pneg %p1421_p7 }
  0x55   : > { %p1429_p12 = pnand %p1428_p11, %p1422_p9 }
  0x57   : > { %1432 = shalt.err (!%p1429_p12)
}
  0x58   : > { %1276 = dma.hbm_to_vmem [thread:$0]  (!%p1703_p6), %s2031_s2, 512, %s1709_s25, [#allocation6], %s1602_s24, %s1602_s24, %s1603_s26  }
  0x59   : > { %s1604_s9 = smov [#allocation10]   ;;  %s1433_s30 = scalar_lea.hbm %s2036_s7, 512 }
  0x5a   : > { %s343_s27 = sshll.u32 %s1604_s9, 4  ;;  %p1434_p13 = scmp.ne.s32.totalorder %s2036_s7, %s1433_s30  ;;  %s344_s27 = int_to_ptr.vmem [resolvable:$true] %s343_s27 }
  0x5b   : > { %p1440_p5 = scmp.lt.u32.totalorder %s1433_s30, %s2036_s7 }
  0x5c   : > { %p1436_p0 = pnand %p1434_p13, %p1719_p8 }
  0x5e   : > { %p1437_p2 = pneg %p1436_p0 }
  0x60   : > { %p1442_p7 = pnand %p1440_p5, %p1437_p2 }
  0x62   : > { %1445 = shalt.err (!%p1442_p7)
}
  0x63   : > { %s1446_s25 = scalar_lea.vmem %s344_s27, 512  ;;  %p1454_p11 = scmp.lt.s32.totalorder %s344_s27, %s344_s27 }
  0x64   : > { %p1447_p9 = scmp.ne.s32.totalorder %s344_s27, %s1446_s25  ;;  %p1455_p12 = scmp.lt.s32.totalorder %s1446_s25, %s1446_s25 }
  0x66   : > { %p1449_p4 = pnand %p1447_p9, %p1719_p8  ;;  %p1456_p1 = por %p1455_p12, %p1454_p11 }
  0x68   : > { %p1450_p10 = pneg %p1449_p4 }
  0x6a   : > { %p1457_p3 = pnand %p1456_p1, %p1450_p10 }
  0x6c   : > { %1460 = shalt.err (!%p1457_p3)
}
  0x6d   : > { %1282 = dma.hbm_to_vmem [thread:$0]  (!%p1703_p6), %s2036_s7, 512, %s344_s27, [#allocation9], %s1602_s24, %s1602_s24, %s1603_s26  }
  0x6e   : > { %s1112_s23 = sadd.s32 4294967294, %s1597_s16   ;;  %s1818_s11 = sadd.s32 1, %s1597_s16  }
  0x6f   : > { %s36_s9 = ssub.s32 %s1597_s16, %s1818_s11  ;;  %s39_s28 = sadd.s32 1, %s1593_s15 }
  0x70   : > { %p37_p1 = scmp.eq.s32.totalorder %s36_s9, 0  ;;  %p46_p3 = scmp.ne.s32.totalorder %s1593_s15, %s1589_s14 }
  0x71   : > { %p47_p8 = scmp.eq.s32.totalorder %s1597_s16, 0  ;;  %p52_p13 = scmp.ne.s32.totalorder %s1589_s14, %s1585_s13 }
  0x72   : > { %s1829_s29 = scalar_select %p37_p1, %s1593_s15, %s39_s28  }
  0x73   : > { %p1831_p0 = por %p47_p8, %p46_p3  ;;  %p2053_p2 = scmp.eq.s32.totalorder %s1687_s19, 0 }
  0x74   : > { %p244_p5 = scmp.eq.s32.totalorder %s1687_s19, 1  ;;  %p250_p7 = scmp.eq.s32.totalorder %s1112_s23, 1 }
  0x75   : > { %p1837_p6 = por %p2053_p2, %p52_p13  ;;  %p1298_p9 = scmp.lt.s32.totalorder %s1597_s16, 2 }
  0x76   : > { %s360_s26 = sand.u32 1, %s1593_s15   ;;  %p1844_p4 = por %p244_p5, %p46_p3 }
  0x77   : > { %p1848_p10 = por %p250_p7, %p52_p13  ;;  %s1119_s17 = sshll.u32 %s360_s26, 3 }
  0x78   : > { %s2055_s27 = scalar_select %p1844_p4, 1, 0 }
  0x79   : > { %s2056_s12 = scalar_select %p1848_p10, 1, 0 }
  0x7a   : > { %s1120_s21 = sshll.u32 %s1597_s16, 7  ;;  %s2057_s0 = sld [smem:[#allocation19_spill]] }
  0x7b   : > { %s364_s8 = scalar_lea.vmem [#allocation2], %s1119_s17  ;;  %p1862_p11 = pnand %p1298_p9, %p1831_p0 }
  0x7c   : > { %s371_s23 = sshll.u32 %s364_s8, 4  ;;  %s361_s28 = scalar_lea.sflag [#allocation3], %s360_s26  ;;  %s1858_s23 = int_to_ptr.vmem [resolvable:$true] %s371_s23 }
  0x7d   : > { %p1463_p1 = pneg %p1862_p11 }
  0x80   : > { %s1856_s18 = scalar_lea.hbm %s2057_s0, %s1120_s21  ;;  %s1466_s22 = scalar_lea.hbm %s2057_s0, 256 }
  0x81   : > { %s1461_s1 = scalar_lea.hbm %s1856_s18, 128  ;;  %p1467_p13 = scmp.lt.u32.totalorder %s1856_s18, %s2057_s0 }
  0x82   : > { %p1462_p12 = scmp.ne.s32.totalorder %s1856_s18, %s1461_s1  ;;  %p1468_p0 = scmp.lt.u32.totalorder %s1466_s22, %s1461_s1 }
  0x83   : > { %p1470_p5 = scmp.lt.u32.totalorder %s1461_s1, %s1856_s18 }
  0x84   : > { %p1464_p3 = pnand %p1463_p1, %p1462_p12  ;;  %p1469_p2 = por %p1468_p0, %p1467_p13 }
  0x86   : > { %p1465_p8 = pneg %p1464_p3  ;;  %p1471_p7 = por %p1470_p5, %p1469_p2 }
  0x88   : > { %p1472_p9 = pnand %p1471_p7, %p1465_p8 }
  0x8a   : > { %1475 = shalt.err (!%p1472_p9)
}
  0x8b   : > { %s1476_s26 = scalar_lea.vmem %s1858_s23, 128  ;;  %s1605_s8 = smov [#allocation2]  }
  0x8c   : > { %p1477_p12 = scmp.ne.s32.totalorder %s1858_s23, %s1476_s26  ;;  %s1481_s17 = sshll.u32 %s1605_s8, 4  ;;  %s1482_s17 = int_to_ptr.vmem [resolvable:$false] %s1481_s17 }
  0x8d   : > { %s1483_s21 = scalar_lea.vmem %s1482_s17, 256  ;;  %p1484_p4 = scmp.lt.s32.totalorder %s1858_s23, %s1482_s17 }
  0x8e   : > { %p1479_p3 = pnand %p1477_p12, %p1463_p1  ;;  %p1485_p13 = scmp.lt.s32.totalorder %s1483_s21, %s1476_s26 }
  0x90   : > { %p1480_p10 = pneg %p1479_p3  ;;  %p1486_p0 = por %p1485_p13, %p1484_p4 }
  0x92   : > { %p1487_p2 = pnand %p1486_p0, %p1480_p10 }
  0x94   : > { %1490 = shalt.err (!%p1487_p2)
}
  0x95   : > { %1286 = dma.hbm_to_vmem [thread:$0]  (!%p1862_p11), %s1856_s18, 128, %s1858_s23, %s361_s28  }
  0x96   : > { %p2059_p8 = scmp.ne.s32.totalorder %s2048_s20, 0 }
  0x97   : > { %s1894_s1 = sand.u32 (!%p2059_p8), 1, %s1589_s14  }
  0x98   : > { %380 = sbr.rel (%p2059_p8) target bundleno = 1359 (0x54f), region = 56  ;;  %s1897_s22 = sshll.u32 (!%p2059_p8), %s1894_s1, 3 }
  0x99   : > { %s383_s30 = scalar_lea.sflag (!%p2059_p8), [#allocation3], %s1894_s1  ;;  %s386_s25 = scalar_lea.vmem (!%p2059_p8), [#allocation2], %s1897_s22 }
  0x9f   : > { %1564 = dma.done.wait (%p1837_p6), %s383_s30, 128  }
  0xa0   : > { %1566 = vsyncadd (%p1837_p6), %s383_s30, 4294967168  ;;  %p2060_p4 = scmp.eq.s32.totalorder %s1687_s19, 0 }
  0xa2   : > { %1568 = dma.done.wait (%p2060_p4), [#allocation6], 1024   ;;  %p2061_p10 = pmov %p2060_p4 }
  0xa3   : > { %p2062_p11 = pmov %p2060_p4 }
  0xa4   : > { %1570 = vsyncadd (%p2061_p10), [#allocation6], 4294966272 }
  0xa5   : > { %1572 = dma.done.wait (%p2062_p11), [#allocation9], 1024   ;;  %p2063_p1 = pmov %p2060_p4 }
  0xa6   : > { %v1606_v0 = vmov 0.0|0.0   ;;  %vm1607_vm0 = vmmov 0   ;;  %v1608_v1 = vmov 0.0   ;;  %v530_v2 = vld [vmem:[#allocation7] sm:$0xff]  ;;  %v531_v3 = vld [vmem:[#allocation7 + $0x8] sm:$0xff]  ;;  %v532_v7 = vld [vmem:[#allocation7 + $0x10] sm:$0xff] }
  0xa7   : > { %1574 = vsyncadd (%p2063_p1), [#allocation9], 4294966272  ;;  %1230 = vmatprep.subr.bf16.mxu1 %v1606_v0  ;;  %1224 = vmatprep.subr.bf16.mxu0 %v1606_v0  ;;  %v445_v4 = vld [vmem:[#allocation5] sm:$0xff]  ;;  %v1231_v5 = vpack.c.bf16 %v531_v3, %v530_v2  ;;  %v446_v6 = vld [vmem:[#allocation5 + $0x8] sm:$0xff]  ;;  %vm456_vm1 = vcmask 261120   ;;  %vm769_vm2 = vcmask 64512  }
  0xa8   : > { %1189 = vmatprep.mubr.msk.f32.mxu1 %vm1607_vm0, %v1608_v1  ;;  %1178 = vmatprep.mubr.msk.f32.mxu0 %vm1607_vm0, %v1608_v1  ;;  %v533_v8 = vld [vmem:[#allocation7 + $0x18] sm:$0xff]  ;;  %v1225_v9 = vpack.c.bf16 %v446_v6, %v445_v4  ;;  %v447_v10 = vld [vmem:[#allocation5 + $0x10] sm:$0xff]  ;;  %v611_v24 = vld [vmem:[#allocation8] sm:$0xff]  ;;  %s443_s26 = scalar_lea.vmem [#allocation12], %s1897_s22  ;;  %s1142_s8 = sshll.u32 %s1687_s19, 7 }
  0xa9   : > { %v448_v11 = vld [vmem:[#allocation5 + $0x18] sm:$0xff]  ;;  %1232 = vmatpush3.bf16.msra.mxu1 %v1231_v5  ;;  %v1234_v12 = vpack.c.bf16 %v533_v8, %v532_v7  ;;  %v1131_v15 = vld [vmem:[%s2034_s5] ss:$0 sm:$0xff]  ;;  %v612_v25 = vld [vmem:[#allocation8 + $0x8] sm:$0xff]  ;;  %s1955_s30 = scalar_lea.hbm %s2039_s10, %s1142_s8  ;;  %s946_s20 = scalar_lea.sflag [#allocation13], %s1894_s1 }
  0xaa   : > { %1226 = vmatpush3.bf16.msra.mxu0 %v1225_v9  ;;  %1233 = vmatprep.subr.bf16.mxu1 %v1606_v0  ;;  %v1228_v13 = vpack.c.bf16 %v448_v11, %v447_v10  ;;  %v444_v14 = vld [vmem:[%s386_s25] sm:$0xff]  ;;  %v1237_v27 = vpack.c.bf16 %v612_v25, %v611_v24  ;;  %v855_v42 = vld [vmem:[#allocation10] sm:$0xff]  ;;  %v856_v43 = vld [vmem:[#allocation10 + $0x8] sm:$0xff]  ;;  %s972_s25 = sshll.u32 %s443_s26, 4  ;;  %p2064_p5 = scmp.ne.s32.totalorder %s2055_s27, 0  ;;  %s973_s25 = int_to_ptr.vmem [resolvable:$true] %s972_s25 }
  0xab   : > { %1227 = vmatprep.subr.bf16.mxu0 %v1606_v0  ;;  %v1129_v16 = vld [vmem:[%s2033_s4] ss:$0 sm:$0xff]  ;;  %v614_v28 = vld [vmem:[#allocation8 + $0x18] sm:$0xff]  ;;  %v1243_v45 = vpack.c.bf16 %v856_v43, %v855_v42  ;;  %s1491_s24 = scalar_lea.vmem %s973_s25, 128  ;;  %s1609_s18 = smov [#allocation12]  }
  0xac   : > { %v613_v26 = vld [vmem:[#allocation8 + $0x10] sm:$0xff]  ;;  %v858_v46 = vld [vmem:[#allocation10 + $0x18] sm:$0xff]  ;;  %p1492_p6 = scmp.ne.s32.totalorder %s973_s25, %s1491_s24  ;;  %s1495_s23 = sshll.u32 %s1609_s18, 4  ;;  %s1496_s23 = int_to_ptr.vmem [resolvable:$false] %s1495_s23 }
  0xad   : > { %1235 = vmatpush3.bf16.msra.mxu1 %v1234_v12  ;;  %v1240_v29 = vpack.c.bf16 %v614_v28, %v613_v26  ;;  %v1133_v39 = vld [vmem:[%s2035_s6] ss:$0 sm:$0xff]  ;;  %s1497_s9 = scalar_lea.vmem %s1496_s23, 256  ;;  %p1498_p12 = scmp.lt.s32.totalorder %s973_s25, %s1496_s23 }
  0xae   : > { %1229 = vmatpush3.bf16.msra.mxu0 %v1228_v13  ;;  %1203 = vmatprep.subr.mxu1 %v1608_v1  ;;  %v857_v44 = vld [vmem:[#allocation10 + $0x10] sm:$0xff]  ;;  %p1493_p7 = pnand %p1492_p6, %p2064_p5  ;;  %p1499_p3 = scmp.lt.s32.totalorder %s1497_s9, %s1491_s24 }
  0xaf   : > { %1236 = vmatprep.subr.bf16.mxu0 %v1606_v0  ;;  %v1246_v47 = vpack.c.bf16 %v858_v46, %v857_v44 }
  0xb0   : > { %1190 = vmatmul.mubr.msk.f32.vlgmr.msra.gmra.mrb[0].mxu1 %vm456_vm1, %v444_v14  ;;  %p1494_p9 = pneg %p1493_p7  ;;  %p1500_p13 = por %p1499_p3, %p1498_p12 }
  0xb1   : > { %1179 = vmatmul.mubr.msk.f32.vlgmr.msra.gmra.mrb[0].mxu0 %vm456_vm1, %v444_v14  ;;  %1205 = vmatprep.mubr.msk.f32.mxu1 %vm1607_vm0, %v1608_v1 }
  0xb2   : > { %1200 = vmatprep.mubr.msk.f32.mxu0 %vm1607_vm0, %v1608_v1  ;;  %1238 = vmatpush3.bf16.msra.mxu0 %v1237_v27  ;;  %p1501_p0 = pnand %p1500_p13, %p1494_p9 }
  0xb3   : > { %1239 = vmatprep.subr.bf16.mxu0 %v1606_v0 }
  0xb6   : > { %1241 = vmatpush3.bf16.msra.mxu0 %v1240_v29 }
  0xb7   : > { %1242 = vmatprep.subr.bf16.mxu0 %v1606_v0 }
  0xb9   : > { %1201 = vmatmul.mubr.msk.f32.vlgmr.msra.gmra.mrb[2].mxu0 %vm456_vm1, %v444_v14 }
  0xba   : > { %1221 = vmatprep.mubr.msk.f32.mxu0 %vm1607_vm0, %v1608_v1  ;;  %1244 = vmatpush3.bf16.msra.mxu0 %v1243_v45 }
  0xbb   : > { %1245 = vmatprep.subr.bf16.mxu0 %v1606_v0 }
  0xbe   : > { %1247 = vmatpush3.bf16.msra.mxu0 %v1246_v47 }
 0x183   : > { %v607_v17 = vpop.f32.mrb[0].mxu1 }
 0x184   : > { %v608_v18 = vadd.f32 %v1131_v15, %v607_v17  ;;  %v526_v19 = vpop.f32.mrb[0].mxu0  ;;  %v1191_v20 = vpop.f32.mrb[1].mxu1 }
 0x185   : > { %v527_v21 = vadd.f32 %v1129_v16, %v526_v19  ;;  %v1180_v22 = vpop.f32.mrb[1].mxu0 }
 0x186   : > { %1204 = vmatpush3.xpose.msk.msra.mxu1 %vm456_vm1, %v608_v18 }
 0x187   : > { %v692_v23 = vmul.f32 0.17677669, %v527_v21  ;;  %1208 = vmatprep.subr.mxu1 %v1608_v1 }
 0x189   : > { %1206 = vmatmul.mubr.msk.f32.vlgmr.msra.gmra.mrb[2].mxu1 %vm456_vm1, %v692_v23 }
 0x18a   : > { %1210 = vmatprep.mubr.msk.f32.mxu1 %vm1607_vm0, %v1608_v1 }
 0x18c   : > { %v688_v38 = vpop.f32.mrb[2].mxu0 }
 0x18d   : > { %v1202_v40 = vpop.f32.mrb[3].mxu0  ;;  %v689_v41 = vadd.f32 %v1133_v39, %v688_v38 }
 0x18f   : > { %1209 = vmatpush3.msra.mxu1 %v689_v41 }
 0x25c   : > { %v765_v30 = vpop.f32.mrb[2].mxu1 }
 0x25d   : > { %v1207_v31 = vpop.f32.mrb[3].mxu1  ;;  %v770_v32 = vsel %vm769_vm2, %v765_v30, -inf }
 0x25e   : > { %771 = vmax.xlane.f32.xlu0 %v770_v32 }
 0x2eb   : > { %v772_v33 = vpop.xlane.xlu0 %771 }
 0x2ec   : > { %v773_v34 = vsub.f32 %v765_v30, %v772_v33 }
 0x2ee   : > { %v774_v35 = vmul.f32 1.442695, %v773_v34 }
 0x2f0   : > { %1345 = vpow2.f32 %v774_v35 }
 0x2fa   : > { %v1346_v36 = vpop.eup %1345 }
 0x2fb   : > { %v776_v37 = vsel %vm769_vm2, %v1346_v36, 0.0 }
 0x2fc   : > { %777 = vadd.xlane.f32.xlu0 %v776_v37 }
 0x389   : > { %v778_v48 = vpop.xlane.xlu0 %777 }
 0x38a   : > { %1347 = vrcp.f32 %v778_v48 }
 0x394   : > { %v1348_v49 = vpop.eup %1347 }
 0x395   : > { %v780_v50 = vmul.f32 %v1348_v49, %v1346_v36 }
 0x397   : > { %1211 = vmatmul.mubr.msk.f32.vlgmr.msra.gmra.mrb[4].mxu1 %vm769_vm2, %v780_v50  ;;  %854 = vst.msk [vmem:[%s443_s26] sm:$0xff] %vm769_vm2, %v780_v50 }
 0x46a   : > { %v850_v51 = vpop.f32.mrb[4].mxu1 }
 0x46b   : > { %v1212_v52 = vpop.f32.mrb[5].mxu1  ;;  %1222 = vmatmul.mubr.msk.f32.vlgmr.msra.gmra.mrb[4].mxu0 %vm456_vm1, %v850_v51 }
 0x46c   : > { %1504 = shalt.err (!%p1501_p0)
}
 0x46d   : > { %s1505_s28 = scalar_lea.hbm %s1955_s30, 128  ;;  %s1509_s21 = scalar_lea.hbm %s2039_s10, 256 }
 0x46e   : > { %p1506_p2 = scmp.ne.s32.totalorder %s1955_s30, %s1505_s28  ;;  %p1510_p10 = scmp.lt.u32.totalorder %s1955_s30, %s2039_s10 }
 0x46f   : > { %p1511_p11 = scmp.lt.u32.totalorder %s1509_s21, %s1505_s28  ;;  %p1513_p6 = scmp.lt.u32.totalorder %s1505_s28, %s1955_s30 }
 0x470   : > { %p1507_p8 = pnand %p1506_p2, %p2064_p5 }
 0x471   : > { %p1512_p1 = por %p1511_p11, %p1510_p10 }
 0x472   : > { %p1508_p4 = pneg %p1507_p8 }
 0x473   : > { %p1514_p7 = por %p1513_p6, %p1512_p1 }
 0x475   : > { %p1515_p9 = pnand %p1514_p7, %p1508_p4 }
 0x477   : > { %1518 = shalt.err (!%p1515_p9)
}
 0x478   : > { %1267 = dma.vmem_to_hbm [thread:$0]  (%p2064_p5), %s973_s25, 128, %s1955_s30, %s946_s20  }
 0x479   : > { %s2065_s26 = sld [smem:[#allocation21_spill]]  ;;  %s436_s17 = scalar_lea.vmem [#allocation11], %s1897_s22 }
 0x47a   : > { %s959_s18 = sshll.u32 %s436_s17, 4  ;;  %s2066_s23 = sld [smem:[#allocation22_spill]]  ;;  %s1986_s18 = int_to_ptr.vmem [resolvable:$true] %s959_s18 }
 0x47b   : > { %s941_s30 = scalar_lea.sflag [#allocation4], %s1894_s1  ;;  %s1519_s25 = scalar_lea.vmem %s1986_s18, 128 }
 0x47c   : > { %p1520_p12 = scmp.ne.s32.totalorder %s1986_s18, %s1519_s25  ;;  %s1610_s22 = smov [#allocation11]  }
 0x47d   : > { %s1523_s19 = sshll.u32 %s1610_s22, 4  ;;  %s1524_s19 = int_to_ptr.vmem [resolvable:$false] %s1523_s19 }
 0x47e   : > { %p1521_p3 = pnand %p1520_p12, %p2064_p5  ;;  %s1525_s20 = scalar_lea.vmem %s1524_s19, 256 }
 0x47f   : > { %v1138_v53 = vld [vmem:[%s2065_s26] ss:$0 sm:$0xff]  ;;  %p1526_p0 = scmp.lt.s32.totalorder %s1986_s18, %s1524_s19  ;;  %p1527_p2 = scmp.lt.s32.totalorder %s1525_s20, %s1519_s25 }
 0x480   : > { %s1984_s0 = scalar_lea.hbm %s2066_s23, %s1142_s8  ;;  %p1522_p13 = pneg %p1521_p3 }
 0x481   : > { %p1528_p8 = por %p1527_p2, %p1526_p0 }
 0x483   : > { %p1529_p4 = pnand %p1528_p8, %p1522_p13 }
 0x53e   : > { %v935_v54 = vpop.f32.mrb[4].mxu0 }
 0x53f   : > { %v936_v55 = vadd.f32 %v1138_v53, %v935_v54  ;;  %v1223_v56 = vpop.f32.mrb[5].mxu0 }
 0x541   : > { %939 = vst.msk [vmem:[%s436_s17] sm:$0xff] %vm456_vm1, %v936_v55 }
 0x542   : > { %1532 = shalt.err (!%p1529_p4)
}
 0x543   : > { %s1533_s1 = scalar_lea.hbm %s1984_s0, 128  ;;  %s1537_s9 = scalar_lea.hbm %s2066_s23, 256 }
 0x544   : > { %p1534_p10 = scmp.ne.s32.totalorder %s1984_s0, %s1533_s1  ;;  %p1538_p6 = scmp.lt.u32.totalorder %s1984_s0, %s2066_s23 }
 0x545   : > { %p1539_p7 = scmp.lt.u32.totalorder %s1537_s9, %s1533_s1  ;;  %p1541_p12 = scmp.lt.u32.totalorder %s1533_s1, %s1984_s0 }
 0x546   : > { %p1535_p11 = pnand %p1534_p10, %p2064_p5 }
 0x547   : > { %p1540_p9 = por %p1539_p7, %p1538_p6 }
 0x548   : > { %p1536_p1 = pneg %p1535_p11 }
 0x549   : > { %p1542_p3 = por %p1541_p12, %p1540_p9 }
 0x54b   : > { %p1543_p13 = pnand %p1542_p3, %p1536_p1 }
 0x54d   : > { %1546 = shalt.err (!%p1543_p13)
}
 0x54e   : > { %1266 = dma.vmem_to_hbm [thread:$0]  (%p2064_p5), %s1986_s18, 128, %s1984_s0, %s941_s30  }
 0x54f PF: > { %s984_s28 = sand.u32 1, %s1585_s13   ;;  %p2067_p0 = scmp.ne.s32.totalorder %s2056_s12, 0 }
 0x550   : > { %p2068_p2 = scmp.ge.s32.totalorder %s1597_s16, 2  ;;  %s985_s21 = scalar_lea.sflag [#allocation4], %s984_s28 }
 0x552   : > { %p1288_p8 = pnand %p2068_p2, %p2067_p0 }
 0x554   : > { %1576 = dma.done.wait (!%p1288_p8), %s985_s21, 128  }
 0x555   : > { %1578 = vsyncadd (!%p1288_p8), %s985_s21, 4294967168  ;;  %s994_s25 = scalar_lea.sflag [#allocation13], %s984_s28 }
 0x556   : > { %1580 = dma.done.wait (!%p1288_p8), %s994_s25, 128  }
 0x557   : > { %1582 = vsyncadd (!%p1288_p8), %s994_s25, 4294967168  ;;  %p29_p5 = scmp.ge.s32.totalorder %s1818_s11, 4   ;;  %s2069_s13 = smov %s1589_s14 }
 0x558   : > { %s2070_s14 = smov %s1593_s15  ;;  %s2071_s15 = smov %s1829_s29 }
 0x559   : > { %s2072_s16 = smov %s1818_s11  ;;  %31 = sbr.rel (!%p29_p5) target bundleno = 14 (0xe), region = 134 }
 0x560   :  { %999 = vsyncpa [#allocation3], 1 }
 0x561   :  { %1001 = vsyncpa [#allocation3 + $0x1], 1 }
 0x562   :  { %1002 = vsyncpa [#allocation6], 1 }
 0x563   :  { %1003 = vsyncpa [#allocation9], 1 }
 0x564   :  { %1004 = vsyncpa [#allocation4], 1 }
 0x565   :  { %1006 = vsyncpa [#allocation4 + $0x1], 1 }
 0x566   :  { %1007 = vsyncpa [#allocation13], 1 }
 0x567   :  { %1009 = vsyncpa [#allocation13 + $0x1], 1 }

</bundles_post_ra>
